<compile_context>
chip_gen: v7x
topology: tpu7x:2x2x1
jax: 0.10.0
libtpu: 0.0.40
codegen_flags: <defaults>
</compile_context>

<pallas_src>
import jax
import jax.numpy as jnp
from jax.experimental import pallas as pl
from jax.experimental.pallas import tpu as pltpu


_LANE = 128
_FALLBACK_VMEM_BYTES = 64 * 1024 * 1024  # conservative (v7x physical VMEM)


def _diff_bdry_kernel(w_ref, temp_ref, x_ref, out_ref):
    # w_ref / temp_ref: (1,) scalars in SMEM.  x_ref / out_ref: (block_rows, lane_w) VMEM tiles.
    w = w_ref[0]
    temp = temp_ref[0]

    # Hoisted scalar math (once per grid step, scalar unit):
    #   sigmoid(temp*(x + w/2)) - sigmoid(temp*(x - w/2))
    # = 0.5*(tanh(temp*x/2 + temp*w/4) - tanh(temp*x/2 - temp*w/4))
    half_temp = temp * 0.5
    a = temp * w * 0.25

    t = x_ref[...] * half_temp                       # one VALU mul per element
    out = 0.5 * (jnp.tanh(t + a) - jnp.tanh(t - a))  # two EUP tanh per element
    out_ref[...] = out.astype(out_ref.dtype)


def _vmem_capacity_bytes():
    try:
        info = pltpu.get_tpu_info()
        cap = int(getattr(info, "vmem_capacity_bytes"))
        if cap > 0:
            return cap
    except Exception:
        pass
    return _FALLBACK_VMEM_BYTES


def _pick_layout(x):
    """Lane-dense (rows, lane_w) view of x; avoids any copy when the size allows it.

    Returns (x2d, pad) where pad is the number of tail elements appended (ragged fallback only).
    """
    n = x.size
    # Common MAPS case: trailing dim already a multiple of 128 and of sane size -> pure reshape.
    last = x.shape[-1] if x.ndim >= 1 else 0
    if last >= _LANE and last % _LANE == 0 and last * 8 * 4 <= 8 * 1024 * 1024:
        return x.reshape(n // last, last), 0
    # Otherwise try a set of 128-multiple lane widths that divide the flat size -> pure reshape.
    for lane_w in (1024, 512, 256, 128):
        if n >= lane_w and n % lane_w == 0:
            return x.reshape(n // lane_w, lane_w), 0
    # Ragged fallback: pad only the tail (one extra pass over the array; unavoidable here).
    lane_w = 1024 if n >= 1024 else _LANE
    pad = (-n) % lane_w
    flat = jnp.pad(x.reshape(-1), (0, pad))
    return flat.reshape(-1, lane_w), pad


def _diff_bdry_pallas(x, w_arr, t_arr):
    orig_shape = x.shape
    n = x.size

    x2d, pad = _pick_layout(x)
    rows, lane_w = x2d.shape

    # Generation-aware VMEM budget; leave headroom for compiler scratch.
    usable_vmem = int(0.75 * _vmem_capacity_bytes())
    # ~8 MiB f32 tiles where VMEM allows (in+out double-buffered = 4 live tiles).
    target_tile_bytes = min(8 * 1024 * 1024, max(usable_vmem // 6, 64 * 1024))

    block_rows = (target_tile_bytes // (4 * lane_w)) // 8 * 8
    block_rows = max(block_rows, 8)
    if block_rows >= rows:
        block_rows = rows  # full extent: satisfies the (8,128) layout rule regardless of size
    grid = (pl.cdiv(rows, block_rows),)

    tile_bytes = block_rows * lane_w * 4
    vmem_limit = min(max(4 * tile_bytes + (2 << 20), 16 << 20), usable_vmem)

    out2d = pl.pallas_call(
        _diff_bdry_kernel,
        out_shape=jax.ShapeDtypeStruct((rows, lane_w), jnp.float32),
        grid=grid,
        in_specs=[
            pl.BlockSpec(memory_space=pltpu.MemorySpace.SMEM),   # w    (scalar)
            pl.BlockSpec(memory_space=pltpu.MemorySpace.SMEM),   # temp (scalar)
            pl.BlockSpec((block_rows, lane_w), lambda i: (i, 0)),
        ],
        out_specs=pl.BlockSpec((block_rows, lane_w), lambda i: (i, 0)),
        compiler_params=pltpu.CompilerParams(
            # TODO(synk): on v7x, consider pltpu.CORE_PARALLEL / core_map split if profiling
            # shows only one TensorCore engaged with plain "parallel".
            dimension_semantics=("parallel",),
            vmem_limit_bytes=int(vmem_limit),
        ),
    )(w_arr, t_arr, x2d)

    if pad:
        return out2d.reshape(-1)[:n].reshape(orig_shape)
    return out2d.reshape(orig_shape)


def diff_bdry_forward(axis_tensor, w, temp, *, min_pallas_elems=1 << 20):
    """Element-wise smooth-boundary window, any input shape, float32 output."""
    x = jnp.asarray(axis_tensor, jnp.float32)
    w = jnp.asarray(w, jnp.float32)
    temp = jnp.asarray(temp, jnp.float32)

    if x.size < min_pallas_elems:
        # Small-input fast path: launch/reshape overhead dwarfs the useful work at MAPS sizes;
        # XLA fuses this element-wise expression.
        half_w = w * 0.5
        return jax.nn.sigmoid((x + half_w) * temp) - jax.nn.sigmoid((x - half_w) * temp)

    return _diff_bdry_pallas(x, w.reshape(1), temp.reshape(1))


class DiffBdry:
    """JAX/Pallas port of the PyTorch DiffBdry module (forward pass only)."""

    def __init__(self, total_length: float, *, min_pallas_elems: int = 1 << 20) -> None:
        self.total_length = float(total_length)  # used only by the reference backward
        self.min_pallas_elems = int(min_pallas_elems)

    def __call__(self, axis_tensor, w, temp):
        return diff_bdry_forward(
            axis_tensor, w, temp, min_pallas_elems=self.min_pallas_elems
        )

    def extra_repr(self) -> str:
        return f"total length={self.total_length}"


def _reference(axis_tensor, w, temp):
    # Pure-JAX reference (original sigmoid form) for correctness checking.
    half_w = w * 0.5
    return jax.nn.sigmoid((axis_tensor + half_w) * temp) - jax.nn.sigmoid(
        (axis_tensor - half_w) * temp
    )


if __name__ == "__main__":
    key = jax.random.PRNGKey(0)
    k1, k2 = jax.random.split(key)

    total_length = 4.0
    H, W = 16, 256  # typical MAPS-sized axis grid; last dim multiple of 128 -> no pad path

    coords = jnp.linspace(-total_length / 2, total_length / 2, W, dtype=jnp.float32)
    axis_tensor = jnp.broadcast_to(coords[None, :], (H, W))
    axis_tensor = axis_tensor + 0.01 * jax.random.normal(k1, (H, W), dtype=jnp.float32)

    w = jnp.float32(1.5)      # boundary (waveguide) width — the learnable scalar in MAPS
    temp = jnp.float32(50.0)  # sharpness temperature

    ref = _reference(axis_tensor, w, temp)

    # 1) Force the Pallas kernel (min_pallas_elems=0) on the small, 128-aligned input.
    out_pallas = diff_bdry_forward(axis_tensor, w, temp, min_pallas_elems=0)
    out_pallas = jax.block_until_ready(out_pallas)
    assert out_pallas.shape == (H, W) and out_pallas.dtype == jnp.float32
    assert jnp.allclose(out_pallas, ref, atol=1e-5, rtol=1e-5), "Pallas kernel mismatch"

    # 2) Default module path (small input -> fused jnp fast path).
    layer = DiffBdry(total_length)
    out_fast = jax.block_until_ready(layer(axis_tensor, w, temp))
    assert jnp.allclose(out_fast, ref, atol=1e-6, rtol=1e-6), "fast-path mismatch"

    # 3) Ragged shape through the Pallas pad-fallback path.
    ragged = 0.02 * jax.random.normal(k2, (7, 100), dtype=jnp.float32)
    out_ragged = jax.block_until_ready(
        diff_bdry_forward(ragged, w, temp, min_pallas_elems=0)
    )
    assert out_ragged.shape == (7, 100)
    assert jnp.allclose(out_ragged, _reference(ragged, w, temp), atol=1e-5, rtol=1e-5), (
        "Pallas ragged-path mismatch"
    )

    print("KERNEL_OK")
</pallas_src>

<mosaic_0001>
module attributes {stable_mosaic.version = 11 : i64} {
  func.func @_diff_bdry_kernel(%arg0: i32, %arg1: memref<1xf32, #tpu.memory_space<smem>>, %arg2: memref<1xf32, #tpu.memory_space<smem>>, %arg3: memref<16x256xf32, #tpu.memory_space<vmem>>, %arg4: memref<16x256xf32, #tpu.memory_space<vmem>>) attributes {dimension_semantics = [#tpu.dimension_semantics<parallel>], iteration_bounds = array<i64: 1>, scalar_prefetch = 0 : i64, scratch_operands = 0 : i64, tpu.core_type = #tpu.core_type<tc>, window_params = [{transform_indices = @transform_0, window_bounds = array<i64: 1>}, {transform_indices = @transform_1, window_bounds = array<i64: 1>}, {transform_indices = @transform_2, window_bounds = array<i64: 16, 256>}, {transform_indices = @transform_3, window_bounds = array<i64: 16, 256>}]} {
    %c0 = arith.constant 0 : index
    %0 = memref.load %arg1[%c0] : memref<1xf32, #tpu.memory_space<smem>>
    %c0_0 = arith.constant 0 : index
    %1 = memref.load %arg2[%c0_0] : memref<1xf32, #tpu.memory_space<smem>>
    %cst = arith.constant 5.000000e-01 : f32
    %2 = arith.mulf %1, %cst : f32
    %3 = arith.mulf %1, %0 : f32
    %cst_1 = arith.constant 2.500000e-01 : f32
    %4 = arith.mulf %3, %cst_1 : f32
    %c0_2 = arith.constant 0 : index
    %c0_3 = arith.constant 0 : index
    %5 = vector.load %arg3[%c0_2, %c0_3] : memref<16x256xf32, #tpu.memory_space<vmem>>, vector<16x256xf32>
    %6 = vector.broadcast %2 : f32 to vector<16x256xf32>
    %7 = arith.mulf %5, %6 : vector<16x256xf32>
    %8 = vector.broadcast %4 : f32 to vector<16x256xf32>
    %9 = arith.addf %7, %8 : vector<16x256xf32>
    %10 = math.tanh %9 : vector<16x256xf32>
    %11 = vector.broadcast %4 : f32 to vector<16x256xf32>
    %12 = arith.subf %7, %11 : vector<16x256xf32>
    %13 = math.tanh %12 : vector<16x256xf32>
    %14 = arith.subf %10, %13 : vector<16x256xf32>
    %cst_4 = arith.constant 5.000000e-01 : f32
    %15 = vector.broadcast %cst_4 : f32 to vector<16x256xf32>
    %16 = arith.mulf %15, %14 : vector<16x256xf32>
    %c0_5 = arith.constant 0 : index
    %c0_6 = arith.constant 0 : index
    %17 = vector.load %arg4[%c0_5, %c0_6] : memref<16x256xf32, #tpu.memory_space<vmem>>, vector<16x256xf32>
    tpu.vector_store %arg4[%c0_5, %c0_6], %16 {strides = array<i32>} : memref<16x256xf32, #tpu.memory_space<vmem>>, vector<16x256xf32>,
    return
  }
  func.func @transform_0(%arg0: i32) -> i32 {
    %c0_i32 = arith.constant 0 : i32
    %c0_i32_0 = arith.constant 0 : i32
    return %c0_i32 : i32
  }
  func.func @transform_1(%arg0: i32) -> i32 {
    %c0_i32 = arith.constant 0 : i32
    %c0_i32_0 = arith.constant 0 : i32
    return %c0_i32 : i32
  }
  func.func @transform_2(%arg0: i32) -> (i32, i32) {
    %c0_i32 = arith.constant 0 : i32
    %c0_i32_0 = arith.constant 0 : i32
    return %arg0, %c0_i32 : i32, i32
  }
  func.func @transform_3(%arg0: i32) -> (i32, i32) {
    %c0_i32 = arith.constant 0 : i32
    %c0_i32_0 = arith.constant 0 : i32
    return %arg0, %c0_i32 : i32, i32
  }
}

</mosaic_0001>

<bundles_post_ra>
// kernel: tpu_custom_call.1
= control target key start
LH: loop header
LB: loop body
LE: loop exit
PB: predicated region body
PF: predicated region fallthrough
CT: control target
= control target key end

     0   :  { %10 = vsyncpa [#allocation5], 0  ;;  %s222_s0 = inlined_call_operand.<no memory space> [shape: f32[1], index: 0, kind: input, shape index: {}]   ;;  %s223_s1 = inlined_call_operand.<no memory space> [shape: f32[1], index: 1, kind: input, shape index: {}]   ;;  %s224_s2 = inlined_call_operand.hbm [shape: f32[16,256], index: 2, kind: input, shape index: {}]   ;;  %s225_s3 = inlined_call_operand.hbm [shape: f32[16,256], index: 3, kind: output, shape index: {}]  }
   0x1   :  { %11 = vsyncpa [#allocation6], 0  ;;  %s159_s12 = smov [#allocation4]   ;;  %s111_s16 = scalar_lea.hbm %s224_s2, 512 }
   0x2   :  { %s21_s13 = sshll.u32 %s159_s12, 4  ;;  %p112_p0 = scmp.ne.s32.totalorder %s224_s2, %s111_s16  ;;  %s22_s13 = int_to_ptr.vmem [resolvable:$true] %s21_s13 }
   0x3   :  { %p115_p1 = scmp.lt.u32.totalorder %s111_s16, %s224_s2 }
   0x5   :  { %p117_p2 = pnand %p115_p1, %p112_p0 }
   0x7   :  { %120 = shalt.err (!%p117_p2)
}
   0x8   :  { %s121_s21 = scalar_lea.vmem %s22_s13, 512  ;;  %p126_p4 = scmp.lt.s32.totalorder %s22_s13, %s22_s13 }
   0x9   :  { %p122_p3 = scmp.ne.s32.totalorder %s22_s13, %s121_s21  ;;  %p127_p5 = scmp.lt.s32.totalorder %s121_s21, %s121_s21 }
   0xb   :  { %p128_p6 = por %p127_p5, %p126_p4 }
   0xd   :  { %p129_p7 = pnand %p128_p6, %p122_p3 }
   0xf   :  { %132 = shalt.err (!%p129_p7)
}
  0x10   :  { %s160_s22 = smov 256   ;;  %s161_s23 = smov 16  }
  0x11   :  { %27 = dma.hbm_to_vmem [thread:$0]  %s224_s2, 512, %s22_s13, [#allocation5], %s160_s22, %s160_s22, %s161_s23  }
  0x12   :  { %155 = dma.done.wait [#allocation5], 512  }
  0x13   :  { %156 = vsyncadd [#allocation5], 4294966784  ;;  %s33_s28 = smul.f32 0.5, %s223_s1  ;;  %v36_v1 = vld [vmem:[#allocation4] sm:$0xff]  ;;  %v37_v3 = vld [vmem:[#allocation4 + $0x8] sm:$0xff] }
  0x14   :  { %s34_s6 = smul.f32 %s223_s1, %s222_s0  ;;  %v38_v4 = vld [vmem:[#allocation4 + $0x10] sm:$0xff]  ;;  %v39_v8 = vld [vmem:[#allocation4 + $0x18] sm:$0xff]  ;;  %s162_s0 = smov [#allocation7]  }
  0x15   :  { %v40_v0 = vstv %s33_s28  ;;  %s79_s1 = sshll.u32 %s162_s0, 4  ;;  %s80_s1 = int_to_ptr.vmem [resolvable:$true] %s79_s1 }
  0x16   :  { %s35_s7 = smul.f32 0.25, %s34_s6  ;;  %v41_v5 = vmul.f32 %v40_v0, %v36_v1  ;;  %v42_v6 = vmul.f32 %v40_v0, %v37_v3  ;;  %v43_v7 = vmul.f32 %v40_v0, %v38_v4  ;;  %v44_v12 = vmul.f32 %v40_v0, %v39_v8  ;;  %s133_s2 = scalar_lea.vmem %s80_s1, 512 }
  0x17   :  { %p134_p8 = scmp.ne.s32.totalorder %s80_s1, %s133_s2  ;;  %p138_p9 = scmp.lt.s32.totalorder %s80_s1, %s80_s1 }
  0x18   :  { %v45_v2 = vstv %s35_s7  ;;  %p139_p10 = scmp.lt.s32.totalorder %s133_s2, %s133_s2 }
  0x19   :  { %v46_v9 = vadd.f32 %v45_v2, %v41_v5  ;;  %v54_v10 = vsub.f32 %v41_v5, %v45_v2  ;;  %v47_v11 = vadd.f32 %v45_v2, %v42_v6  ;;  %v55_v13 = vsub.f32 %v42_v6, %v45_v2 }
  0x1a   :  { %v48_v14 = vadd.f32 %v45_v2, %v43_v7  ;;  %v56_v15 = vsub.f32 %v43_v7, %v45_v2  ;;  %v49_v16 = vadd.f32 %v45_v2, %v44_v12  ;;  %v57_v17 = vsub.f32 %v44_v12, %v45_v2  ;;  %p140_p11 = por %p139_p10, %p138_p9 }
  0x1b   :  { %95 = vtanh.f32 %v46_v9 }
  0x1c   :  { %97 = vtanh.f32 %v54_v10  ;;  %p141_p12 = pnand %p140_p11, %p134_p8 }
  0x1d   :  { %99 = vtanh.f32 %v47_v11 }
  0x1e   :  { %101 = vtanh.f32 %v55_v13 }
  0x1f   :  { %103 = vtanh.f32 %v48_v14 }
  0x20   :  { %105 = vtanh.f32 %v56_v15 }
  0x21   :  { %107 = vtanh.f32 %v49_v16 }
  0x22   :  { %109 = vtanh.f32 %v57_v17 }
  0x25   :  { %v96_v18 = vpop.eup %95 }
  0x26   :  { %v98_v19 = vpop.eup %97 }
  0x27   :  { %v100_v20 = vpop.eup %99  ;;  %v62_v21 = vsub.f32 %v96_v18, %v98_v19 }
  0x28   :  { %v102_v22 = vpop.eup %101 }
  0x29   :  { %v104_v23 = vpop.eup %103  ;;  %v66_v24 = vmul.f32 0.5, %v62_v21  ;;  %v63_v25 = vsub.f32 %v100_v20, %v102_v22 }
  0x2a   :  { %v106_v26 = vpop.eup %105 }
  0x2b   :  { %v108_v27 = vpop.eup %107  ;;  %70 = vst [vmem:[#allocation7] sm:$0xff] %v66_v24  ;;  %v67_v28 = vmul.f32 0.5, %v63_v25  ;;  %v64_v29 = vsub.f32 %v104_v23, %v106_v26 }
  0x2c   :  { %v110_v30 = vpop.eup %109 }
  0x2d   :  { %71 = vst [vmem:[#allocation7 + $0x8] sm:$0xff] %v67_v28  ;;  %v68_v31 = vmul.f32 0.5, %v64_v29  ;;  %v65_v32 = vsub.f32 %v108_v27, %v110_v30 }
  0x2f   :  { %72 = vst [vmem:[#allocation7 + $0x10] sm:$0xff] %v68_v31  ;;  %v69_v33 = vmul.f32 0.5, %v65_v32 }
  0x31   :  { %73 = vst [vmem:[#allocation7 + $0x18] sm:$0xff] %v69_v33 }
  0x32   :  { %144 = shalt.err (!%p141_p12)
}
  0x33   :  { %s145_s10 = scalar_lea.hbm %s225_s3, 512 }
  0x34   :  { %p146_p13 = scmp.ne.s32.totalorder %s225_s3, %s145_s10  ;;  %p149_p0 = scmp.lt.u32.totalorder %s145_s10, %s225_s3 }
  0x36   :  { %p151_p1 = pnand %p149_p0, %p146_p13 }
  0x38   :  { %154 = shalt.err (!%p151_p1)
}
  0x39   :  { %85 = dma.vmem_to_hbm [thread:$0]  %s80_s1, 512, %s225_s3, [#allocation6], %s160_s22, %s160_s22, %s161_s23  }
  0x3a   :  { %157 = dma.done.wait [#allocation6], 512  }
  0x3b   :  { %158 = vsyncadd [#allocation6], 4294966784 }
  0x3c   :  { %89 = vsyncpa [#allocation5], 1 }
  0x3d   :  { %90 = vsyncpa [#allocation6], 1 }

</bundles_post_ra>
